<compile_context>
chip_gen: v5e
topology: v5e:2x2
jax: 0.10.0
libtpu: 0.0.40
codegen_flags: <defaults>
</compile_context>

<pallas_src>
import functools

import jax
import jax.numpy as jnp
from jax import lax
from jax.experimental import pallas as pl
from jax.experimental.pallas import tpu as pltpu


_NEG_BIG = -1e30  # "minus infinity" for padded logit lanes (finite -> no NaN risk)


def _round_up(x, m):
    return ((x + m - 1) // m) * m


# -----------------------------------------------------------------------------
# Pallas kernel: BayesianLinear (local reparameterization) + log_softmax
# -----------------------------------------------------------------------------
def _bayes_linear_logsoftmax_kernel(
    x_ref,      # (TM, D_in)   f32   input rows
    z_ref,      # (TM, D_in)   f32   per-row flow sample z_k
    a_ref,      # (D_in, O_p)  bf16  alpha_q * weight_mu               (K-major)
    c_ref,      # (D_in, O_p)  bf16  alpha_q * weight_sigma**2          (K-major)
    d_ref,      # (D_in, O_p)  bf16  alpha_q*(1-alpha_q)*weight_mu**2   (K-major)
    bmu_ref,    # (1, O_p)     f32   bias_mu          (padded lanes = -1e30)
    bs2_ref,    # (1, O_p)     f32   bias_sigma**2    (padded lanes = 0)
    eps_ref,    # (TM, O_p)    f32   reparameterization noise (padded lanes = 0)
    out_ref,    # (TM, O_p)    f32   log_softmax activations
):
    x = x_ref[...]
    z = z_ref[...]

    # Fold z into the activations instead of the weights.
    xz = x * z
    xz_b = xz.astype(jnp.bfloat16)
    xz2_b = (xz * xz).astype(jnp.bfloat16)
    x2_b = (x * x).astype(jnp.bfloat16)

    # (TM, K) x (K, O_p) -> (TM, O_p); RHS already K-major, no transpose needed.
    dn = (((1,), (0,)), ((), ()))
    e_b = (
        lax.dot_general(xz_b, a_ref[...], dn, preferred_element_type=jnp.float32)
        + bmu_ref[...]
    )
    var_b = (
        lax.dot_general(x2_b, c_ref[...], dn, preferred_element_type=jnp.float32)
        + lax.dot_general(xz2_b, d_ref[...], dn, preferred_element_type=jnp.float32)
        + bs2_ref[...]
    )

    activations = e_b + jnp.sqrt(var_b) * eps_ref[...]

    # log_softmax over the (lane-dense) output axis; padded lanes are ~-1e30
    # so exp() underflows to 0 and the normalization is exact.
    m = jnp.max(activations, axis=-1, keepdims=True)
    shifted = activations - m
    lse = jnp.log(jnp.sum(jnp.exp(shifted), axis=-1, keepdims=True))
    out_ref[...] = shifted - lse


# -----------------------------------------------------------------------------
# Plain-JAX precompute of the input-invariant parameter transforms
# -----------------------------------------------------------------------------
def _precompute_params(params, o_pad):
    w_mu = params["weight_mu"].astype(jnp.float32)                 # (O, D_in)
    alpha_q = jax.nn.sigmoid(params["lambdal"].astype(jnp.float32))
    w_sigma = jax.nn.softplus(params["weight_rho"].astype(jnp.float32))
    b_sigma = jax.nn.softplus(params["bias_rho"].astype(jnp.float32))

    o, _ = w_mu.shape

    def pad_kmajor(mat):  # (O, D_in) -> (D_in, O_pad), bf16
        return jnp.pad(mat.T, ((0, 0), (0, o_pad - o))).astype(jnp.bfloat16)

    a_t = pad_kmajor(alpha_q * w_mu)
    c_t = pad_kmajor(alpha_q * (w_sigma * w_sigma))
    d_t = pad_kmajor(alpha_q * (1.0 - alpha_q) * (w_mu * w_mu))

    b_mu = jnp.pad(
        params["bias_mu"].astype(jnp.float32), (0, o_pad - o),
        constant_values=_NEG_BIG,
    ).reshape(1, o_pad)
    b_sig2 = jnp.pad(b_sigma * b_sigma, (0, o_pad - o)).reshape(1, o_pad)
    return a_t, c_t, d_t, b_mu, b_sig2


# -----------------------------------------------------------------------------
# Wrapper
# -----------------------------------------------------------------------------
@functools.partial(jax.jit, static_argnames=("block_rows",))
def bayesian_network_forward(x, params, z_rows, eps, *, block_rows=256):
    """log_softmax(BayesianLinear(x)) with the local reparameterization trick.

    x      : (M, D_in)  input rows (M may be B real rows or B*S fused MC rows)
    z_rows : (M, D_in)  per-row flow sample z_k (broadcast/repeat by the caller)
    eps    : (M, O)     reparameterization noise
    returns: (M, O)     log-softmax activations (torch dim=1)
    """
    m_rows, d_in = x.shape
    o = params["bias_mu"].shape[-1]
    o_pad = _round_up(o, 128)

    m8 = _round_up(m_rows, 8)
    tm = min(block_rows, m8)
    m_pad = _round_up(m_rows, tm)
    grid = (m_pad // tm,)

    a_t, c_t, d_t, b_mu, b_sig2 = _precompute_params(params, o_pad)

    x_p = jnp.pad(x.astype(jnp.float32), ((0, m_pad - m_rows), (0, 0)))
    z_p = jnp.pad(z_rows.astype(jnp.float32), ((0, m_pad - m_rows), (0, 0)))
    eps_p = jnp.pad(
        eps.astype(jnp.float32), ((0, m_pad - m_rows), (0, o_pad - o)))

    out = pl.pallas_call(
        _bayes_linear_logsoftmax_kernel,
        out_shape=jax.ShapeDtypeStruct((m_pad, o_pad), jnp.float32),
        grid=grid,
        in_specs=[
            pl.BlockSpec((tm, d_in), lambda i: (i, 0)),       # x
            pl.BlockSpec((tm, d_in), lambda i: (i, 0)),       # z
            pl.BlockSpec((d_in, o_pad), lambda i: (0, 0)),    # A
            pl.BlockSpec((d_in, o_pad), lambda i: (0, 0)),    # C
            pl.BlockSpec((d_in, o_pad), lambda i: (0, 0)),    # D
            pl.BlockSpec((1, o_pad), lambda i: (0, 0)),       # bias_mu
            pl.BlockSpec((1, o_pad), lambda i: (0, 0)),       # bias_sigma^2
            pl.BlockSpec((tm, o_pad), lambda i: (i, 0)),      # eps
        ],
        out_specs=pl.BlockSpec((tm, o_pad), lambda i: (i, 0)),
        compiler_params=pltpu.CompilerParams(
            dimension_semantics=("parallel",)),
    )(x_p, z_p, a_t, c_t, d_t, b_mu, b_sig2, eps_p)

    return out[:m_rows, :o]


def fuse_mc_samples(x, z_samples, eps_samples):
    """Fuse S Monte-Carlo forward passes into one kernel call (M = S*B rows)."""
    s, _ = z_samples.shape
    b = x.shape[0]
    x_rows = jnp.tile(x, (s, 1))                 # (S*B, D_in)
    z_rows = jnp.repeat(z_samples, b, axis=0)    # (S*B, D_in)
    eps_rows = eps_samples.reshape(s * b, -1)    # (S*B, O)
    return x_rows, z_rows, eps_rows


# -----------------------------------------------------------------------------
# Deterministic parameter construction (mirrors BayesianLinear.__init__ shapes)
# -----------------------------------------------------------------------------
def init_params(key, in_features, out_features):
    ks = jax.random.split(key, 7)
    return {
        "weight_mu": jax.random.uniform(
            ks[0], (out_features, in_features), jnp.float32, -0.01, 0.01),
        "weight_rho": jax.random.uniform(
            ks[1], (out_features, in_features), jnp.float32, -5.0, -4.0),
        "lambdal": jax.random.uniform(
            ks[2], (out_features, in_features), jnp.float32, 0.0, 1.0),
        "bias_mu": jax.random.uniform(
            ks[3], (out_features,), jnp.float32, -0.01, 0.01),
        "bias_rho": jax.random.uniform(
            ks[4], (out_features,), jnp.float32, -5.0, -4.0),
        "q0_mean": 0.001 * jax.random.normal(ks[5], (in_features,), jnp.float32),
        "q0_log_var": -9.0 + 0.001 * jax.random.normal(
            ks[6], (in_features,), jnp.float32),
    }


def sample_z(key, params, num_samples=1):
    """z = q0_mean + sqrt(exp(q0_log_var)) * eps ; flow = identity (see TODO)."""
    q0_std = jnp.sqrt(jnp.exp(params["q0_log_var"]))
    epsilon_z = jax.random.normal(
        key, (num_samples,) + q0_std.shape, jnp.float32)
    return params["q0_mean"] + q0_std * epsilon_z  # (S, D_in)


if __name__ == "__main__":
    # l1 = BayesianLinear(p - 1, 8); choose p = 17 -> D_in = 16, O = 8, batch = 2.
    # Fuse S = 64 Monte-Carlo samples so the kernel sees M = 128 lane-dense rows.
    B, D_IN, D_OUT, S = 2, 16, 8, 64

    root = jax.random.PRNGKey(0)
    k_param, k_x, k_z, k_eps = jax.random.split(root, 4)

    params = init_params(k_param, D_IN, D_OUT)
    x = jax.random.normal(k_x, (B, D_IN), jnp.float32)
    z_samples = sample_z(k_z, params, num_samples=S)                  # (S, D_in)
    eps_samples = jax.random.normal(k_eps, (S, B, D_OUT), jnp.float32)

    x_rows, z_rows, eps_rows = fuse_mc_samples(x, z_samples, eps_samples)
    out = bayesian_network_forward(x_rows, params, z_rows, eps_rows)
    out = jax.block_until_ready(out)

    # Reference: exact f32 port of the module's training/ensemble math,
    # vmapped over the S Monte-Carlo samples.
    def ref_one(z_k, eps):
        alpha_q = jax.nn.sigmoid(params["lambdal"])
        w_sigma = jax.nn.softplus(params["weight_rho"])
        b_sigma = jax.nn.softplus(params["bias_rho"])
        e_w = params["weight_mu"] * alpha_q * z_k
        var_w = alpha_q * (w_sigma ** 2
                           + (1.0 - alpha_q) * (params["weight_mu"] * z_k) ** 2)
        e_b = x @ e_w.T + params["bias_mu"]
        var_b = (x * x) @ var_w.T + b_sigma ** 2
        act = e_b + jnp.sqrt(var_b) * eps
        return jax.nn.log_softmax(act, axis=1)

    ref = jax.vmap(ref_one)(z_samples, eps_samples).reshape(S * B, D_OUT)

    assert out.shape == (S * B, D_OUT)
    row_sums = jnp.exp(out).sum(axis=1)
    assert bool(jnp.all(jnp.abs(row_sums - 1.0) < 1e-4))
    assert bool(jnp.max(jnp.abs(out - ref)) < 1e-2)  # bf16 matmul tolerance

    print("KERNEL_OK")
</pallas_src>

<mosaic_0001>
module attributes {stable_mosaic.version = 11 : i64} {
  func.func @_bayes_linear_logsoftmax_kernel(%arg0: i32, %arg1: memref<128x16xf32, #tpu.memory_space<vmem>>, %arg2: memref<128x16xf32, #tpu.memory_space<vmem>>, %arg3: memref<16x128xbf16, #tpu.memory_space<vmem>>, %arg4: memref<16x128xbf16, #tpu.memory_space<vmem>>, %arg5: memref<16x128xbf16, #tpu.memory_space<vmem>>, %arg6: memref<1x128xf32, #tpu.memory_space<vmem>>, %arg7: memref<1x128xf32, #tpu.memory_space<vmem>>, %arg8: memref<128x128xf32, #tpu.memory_space<vmem>>, %arg9: memref<128x128xf32, #tpu.memory_space<vmem>>) attributes {dimension_semantics = [#tpu.dimension_semantics<parallel>], iteration_bounds = array<i64: 1>, scalar_prefetch = 0 : i64, scratch_operands = 0 : i64, tpu.core_type = #tpu.core_type<tc>, window_params = [{transform_indices = @transform_0, window_bounds = array<i64: 128, 16>}, {transform_indices = @transform_1, window_bounds = array<i64: 128, 16>}, {pipeline_mode = #tpu.pipeline_mode<synchronous>, transform_indices = @transform_2, window_bounds = array<i64: 16, 128>}, {pipeline_mode = #tpu.pipeline_mode<synchronous>, transform_indices = @transform_3, window_bounds = array<i64: 16, 128>}, {pipeline_mode = #tpu.pipeline_mode<synchronous>, transform_indices = @transform_4, window_bounds = array<i64: 16, 128>}, {pipeline_mode = #tpu.pipeline_mode<synchronous>, transform_indices = @transform_5, window_bounds = array<i64: 1, 128>}, {pipeline_mode = #tpu.pipeline_mode<synchronous>, transform_indices = @transform_6, window_bounds = array<i64: 1, 128>}, {transform_indices = @transform_7, window_bounds = array<i64: 128, 128>}, {transform_indices = @transform_8, window_bounds = array<i64: 128, 128>}]} {
    %c0 = arith.constant 0 : index
    %c0_0 = arith.constant 0 : index
    %0 = vector.load %arg1[%c0, %c0_0] : memref<128x16xf32, #tpu.memory_space<vmem>>, vector<128x16xf32>
    %c0_1 = arith.constant 0 : index
    %c0_2 = arith.constant 0 : index
    %1 = vector.load %arg2[%c0_1, %c0_2] : memref<128x16xf32, #tpu.memory_space<vmem>>, vector<128x16xf32>
    %2 = arith.mulf %0, %1 : vector<128x16xf32>
    %3 = arith.truncf %2 : vector<128x16xf32> to vector<128x16xbf16>
    %4 = arith.mulf %2, %2 : vector<128x16xf32>
    %5 = arith.truncf %4 : vector<128x16xf32> to vector<128x16xbf16>
    %6 = arith.mulf %0, %0 : vector<128x16xf32>
    %7 = arith.truncf %6 : vector<128x16xf32> to vector<128x16xbf16>
    %c0_3 = arith.constant 0 : index
    %c0_4 = arith.constant 0 : index
    %8 = vector.load %arg3[%c0_3, %c0_4] : memref<16x128xbf16, #tpu.memory_space<vmem>>, vector<16x128xbf16>
    %cst = arith.constant dense<0.000000e+00> : vector<128x128xf32>
    %9 = tpu.matmul %3, %8, %cst {dimension_numbers = #tpu.dot_dimension_numbers<[1], [0], [0], [1], [0, 0, 1, 1], [], []>} : vector<128x16xbf16>, vector<16x128xbf16>, vector<128x128xf32> -> vector<128x128xf32>
    %c0_5 = arith.constant 0 : index
    %c0_6 = arith.constant 0 : index
    %10 = vector.load %arg6[%c0_5, %c0_6] : memref<1x128xf32, #tpu.memory_space<vmem>>, vector<1x128xf32>
    %11 = vector.broadcast %10 : vector<1x128xf32> to vector<128x128xf32>
    %12 = arith.addf %9, %11 : vector<128x128xf32>
    %c0_7 = arith.constant 0 : index
    %c0_8 = arith.constant 0 : index
    %13 = vector.load %arg4[%c0_7, %c0_8] : memref<16x128xbf16, #tpu.memory_space<vmem>>, vector<16x128xbf16>
    %cst_9 = arith.constant dense<0.000000e+00> : vector<128x128xf32>
    %14 = tpu.matmul %7, %13, %cst_9 {dimension_numbers = #tpu.dot_dimension_numbers<[1], [0], [0], [1], [0, 0, 1, 1], [], []>} : vector<128x16xbf16>, vector<16x128xbf16>, vector<128x128xf32> -> vector<128x128xf32>
    %c0_10 = arith.constant 0 : index
    %c0_11 = arith.constant 0 : index
    %15 = vector.load %arg5[%c0_10, %c0_11] : memref<16x128xbf16, #tpu.memory_space<vmem>>, vector<16x128xbf16>
    %cst_12 = arith.constant dense<0.000000e+00> : vector<128x128xf32>
    %16 = tpu.matmul %5, %15, %cst_12 {dimension_numbers = #tpu.dot_dimension_numbers<[1], [0], [0], [1], [0, 0, 1, 1], [], []>} : vector<128x16xbf16>, vector<16x128xbf16>, vector<128x128xf32> -> vector<128x128xf32>
    %17 = arith.addf %14, %16 : vector<128x128xf32>
    %c0_13 = arith.constant 0 : index
    %c0_14 = arith.constant 0 : index
    %18 = vector.load %arg7[%c0_13, %c0_14] : memref<1x128xf32, #tpu.memory_space<vmem>>, vector<1x128xf32>
    %19 = vector.broadcast %18 : vector<1x128xf32> to vector<128x128xf32>
    %20 = arith.addf %17, %19 : vector<128x128xf32>
    %21 = math.sqrt %20 : vector<128x128xf32>
    %c0_15 = arith.constant 0 : index
    %c0_16 = arith.constant 0 : index
    %22 = vector.load %arg8[%c0_15, %c0_16] : memref<128x128xf32, #tpu.memory_space<vmem>>, vector<128x128xf32>
    %23 = arith.mulf %21, %22 : vector<128x128xf32>
    %24 = arith.addf %12, %23 : vector<128x128xf32>
    %cst_17 = arith.constant dense<0xFF800000> : vector<128xf32>
    %25 = vector.multi_reduction <maximumf>, %24, %cst_17 [1] : vector<128x128xf32> to vector<128xf32>
    %26 = vector.shape_cast %25 : vector<128xf32> to vector<128x1xf32>
    %27 = vector.broadcast %26 : vector<128x1xf32> to vector<128x128xf32>
    %28 = arith.subf %24, %27 : vector<128x128xf32>
    %29 = math.exp %28 : vector<128x128xf32>
    %cst_18 = arith.constant dense<0.000000e+00> : vector<128xf32>
    %30 = vector.multi_reduction <add>, %29, %cst_18 [1] : vector<128x128xf32> to vector<128xf32>
    %31 = vector.shape_cast %30 : vector<128xf32> to vector<128x1xf32>
    %32 = math.log %31 : vector<128x1xf32>
    %33 = vector.broadcast %32 : vector<128x1xf32> to vector<128x128xf32>
    %34 = arith.subf %28, %33 : vector<128x128xf32>
    %c0_19 = arith.constant 0 : index
    %c0_20 = arith.constant 0 : index
    %35 = vector.load %arg9[%c0_19, %c0_20] : memref<128x128xf32, #tpu.memory_space<vmem>>, vector<128x128xf32>
    tpu.vector_store %arg9[%c0_19, %c0_20], %34 {strides = array<i32>} : memref<128x128xf32, #tpu.memory_space<vmem>>, vector<128x128xf32>,
    return
  }
  func.func @transform_0(%arg0: i32) -> (i32, i32) {
    %c0_i32 = arith.constant 0 : i32
    %c0_i32_0 = arith.constant 0 : i32
    return %arg0, %c0_i32 : i32, i32
  }
  func.func @transform_1(%arg0: i32) -> (i32, i32) {
    %c0_i32 = arith.constant 0 : i32
    %c0_i32_0 = arith.constant 0 : i32
    return %arg0, %c0_i32 : i32, i32
  }
  func.func @transform_2(%arg0: i32) -> (i32, i32) {
    %c0_i32 = arith.constant 0 : i32
    %c0_i32_0 = arith.constant 0 : i32
    %c0_i32_1 = arith.constant 0 : i32
    return %c0_i32, %c0_i32_0 : i32, i32
  }
  func.func @transform_3(%arg0: i32) -> (i32, i32) {
    %c0_i32 = arith.constant 0 : i32
    %c0_i32_0 = arith.constant 0 : i32
    %c0_i32_1 = arith.constant 0 : i32
    return %c0_i32, %c0_i32_0 : i32, i32
  }
  func.func @transform_4(%arg0: i32) -> (i32, i32) {
    %c0_i32 = arith.constant 0 : i32
    %c0_i32_0 = arith.constant 0 : i32
    %c0_i32_1 = arith.constant 0 : i32
    return %c0_i32, %c0_i32_0 : i32, i32
  }
  func.func @transform_5(%arg0: i32) -> (i32, i32) {
    %c0_i32 = arith.constant 0 : i32
    %c0_i32_0 = arith.constant 0 : i32
    %c0_i32_1 = arith.constant 0 : i32
    return %c0_i32, %c0_i32_0 : i32, i32
  }
  func.func @transform_6(%arg0: i32) -> (i32, i32) {
    %c0_i32 = arith.constant 0 : i32
    %c0_i32_0 = arith.constant 0 : i32
    %c0_i32_1 = arith.constant 0 : i32
    return %c0_i32, %c0_i32_0 : i32, i32
  }
  func.func @transform_7(%arg0: i32) -> (i32, i32) {
    %c0_i32 = arith.constant 0 : i32
    %c0_i32_0 = arith.constant 0 : i32
    return %arg0, %c0_i32 : i32, i32
  }
  func.func @transform_8(%arg0: i32) -> (i32, i32) {
    %c0_i32 = arith.constant 0 : i32
    %c0_i32_0 = arith.constant 0 : i32
    return %arg0, %c0_i32 : i32, i32
  }
}

</mosaic_0001>

<bundles_post_ra>
// kernel: bayesian_network_forward.1
= control target key start
LH: loop header
LB: loop body
LE: loop exit
PB: predicated region body
PF: predicated region fallthrough
CT: control target
= control target key end

     0   :  { %vm146_vm0 = vcmask 130048   ;;  %s1578_s2 = inlined_call_operand.vmem [shape: bf16[16,128], index: 2, kind: input, shape index: {}]   ;;  %s1579_s3 = inlined_call_operand.vmem [shape: bf16[16,128], index: 3, kind: input, shape index: {}]   ;;  %s1580_s4 = inlined_call_operand.vmem [shape: bf16[16,128], index: 4, kind: input, shape index: {}]   ;;  %s1581_s0 = inlined_call_operand.vmem [shape: f32[128,16], index: 0, kind: input, shape index: {}]   ;;  %s1582_s1 = inlined_call_operand.vmem [shape: f32[128,16], index: 1, kind: input, shape index: {}]   ;;  %s1583_s5 = inlined_call_operand.vmem [shape: f32[1,128], index: 5, kind: input, shape index: {}]   ;;  %s1584_s6 = inlined_call_operand.vmem [shape: f32[1,128], index: 6, kind: input, shape index: {}]   ;;  %s1585_s7 = inlined_call_operand.vmem [shape: f32[128,128], index: 7, kind: input, shape index: {}]   ;;  %s1586_s8 = inlined_call_operand.vmem [shape: f32[128,128], index: 8, kind: output, shape index: {}]  }
   0x1   :  { %v858_v0 = vld [vmem:[%s1578_s2] sm:$0xff]  ;;  %v43_v4 = vld [vmem:[%s1581_s0 + $0x68] sm:$0xff]  ;;  %v1052_v26 = vld [vmem:[%s1581_s0 + $0x70] sm:$0xff] }
   0x2   :  { %v859_v1 = vld [vmem:[%s1579_s3] sm:$0xff]  ;;  %861 = vmatpush.bf16.msra.mxu3 %v858_v0  ;;  %v59_v6 = vld [vmem:[%s1582_s1 + $0x68] sm:$0xff]  ;;  %v1030_v9 = vmul.f32 %v43_v4, %v43_v4  ;;  %178 = vmatpush.bf16.msra.mxu0 %v858_v0  ;;  %v1057_v27 = vld [vmem:[%s1581_s0 + $0x78] sm:$0xff] }
   0x3   :  { %v860_v2 = vld [vmem:[%s1580_s4] sm:$0xff]  ;;  %340 = vmatpush.bf16.msra.mxu2 %v859_v1  ;;  %v31_v11 = vld [vmem:[%s1581_s0 + $0x8] sm:$0xff]  ;;  %v75_v12 = vmul.f32 %v59_v6, %v43_v4  ;;  %v32_v28 = vld [vmem:[%s1581_s0 + $0x10] sm:$0xff] }
   0x4   :  { %v42_v3 = vld [vmem:[%s1581_s0 + $0x60] sm:$0xff]  ;;  %261 = vmatpush.bf16.msra.mxu1 %v860_v2  ;;  %v111_v14 = vmul.f32 %v31_v11, %v31_v11  ;;  %v47_v16 = vld [vmem:[%s1582_s1 + $0x8] sm:$0xff]  ;;  %v33_v29 = vld [vmem:[%s1581_s0 + $0x18] sm:$0xff]  ;;  %v112_v38 = vmul.f32 %v32_v28, %v32_v28 }
   0x5   :  { %v58_v5 = vld [vmem:[%s1582_s1 + $0x60] sm:$0xff]  ;;  %v1028_v8 = vmul.f32 %v42_v3, %v42_v3  ;;  %v63_v19 = vmul.f32 %v47_v16, %v31_v11  ;;  %v48_v30 = vld [vmem:[%s1582_s1 + $0x10] sm:$0xff]  ;;  %v49_v31 = vld [vmem:[%s1582_s1 + $0x18] sm:$0xff]  ;;  %v113_v39 = vmul.f32 %v33_v29, %v33_v29  ;;  %v99_v53 = vmul.f32 %v75_v12, %v75_v12 }
   0x6   :  { %v74_v7 = vmul.f32 %v58_v5, %v42_v3  ;;  %v30_v10 = vld [vmem:[%s1581_s0] sm:$0xff]  ;;  %862 = vmatpush.bf16.msrb.mxu3 %v860_v2  ;;  %v60_v32 = vld [vmem:[%s1582_s1 + $0x70] sm:$0xff]  ;;  %v61_v33 = vld [vmem:[%s1582_s1 + $0x78] sm:$0xff]  ;;  %v64_v34 = vmul.f32 %v48_v30, %v32_v28  ;;  %v65_v35 = vmul.f32 %v49_v31, %v33_v29  ;;  %v124_v30 = vmul.f32 %v1052_v26, %v1052_v26 }
   0x7   :  { %v110_v13 = vmul.f32 %v30_v10, %v30_v10  ;;  %v46_v15 = vld [vmem:[%s1582_s1] sm:$0xff]  ;;  %v132_v17 = vpack.c.bf16 %v1030_v9, %v1028_v8  ;;  %v87_v23 = vmul.f32 %v63_v19, %v63_v19  ;;  %v76_v36 = vmul.f32 %v60_v32, %v1052_v26  ;;  %v35_v47 = vld [vmem:[%s1581_s0 + $0x28] sm:$0xff]  ;;  %v52_v11 = vld [vmem:[%s1582_s1 + $0x30] sm:$0xff] }
   0x8   :  { %v62_v18 = vmul.f32 %v46_v15, %v30_v10  ;;  %v84_v20 = vpack.c.bf16 %v75_v12, %v74_v7  ;;  %v77_v37 = vmul.f32 %v61_v33, %v1057_v27  ;;  %v88_v40 = vmul.f32 %v64_v34, %v64_v34  ;;  %v34_v46 = vld [vmem:[%s1581_s0 + $0x20] sm:$0xff]  ;;  %v51_v49 = vld [vmem:[%s1582_s1 + $0x28] sm:$0xff]  ;;  %v37_v10 = vld [vmem:[%s1581_s0 + $0x38] sm:$0xff] }
   0x9   :  { %v126_v21 = vpack.c.bf16 %v111_v14, %v110_v13  ;;  %v89_v41 = vmul.f32 %v65_v35, %v65_v35  ;;  %v127_v43 = vpack.c.bf16 %v113_v39, %v112_v38  ;;  %v79_v45 = vpack.c.bf16 %v65_v35, %v64_v34  ;;  %v50_v48 = vld [vmem:[%s1582_s1 + $0x20] sm:$0xff]  ;;  %v39_v57 = vld [vmem:[%s1581_s0 + $0x48] sm:$0xff]  ;;  %v53_v12 = vld [vmem:[%s1582_s1 + $0x38] sm:$0xff] }
   0xa   :  { %v86_v22 = vmul.f32 %v62_v18, %v62_v18  ;;  %832 = vmatmul.msk.bf16.vlgmr.msra.gmra.mxu3 %vm146_vm0, %v84_v20  ;;  %v78_v25 = vpack.c.bf16 %v63_v19, %v62_v18  ;;  %v85_v42 = vpack.c.bf16 %v77_v37, %v76_v36  ;;  %v66_v50 = vmul.f32 %v50_v48, %v34_v46  ;;  %v38_v56 = vld [vmem:[%s1581_s0 + $0x40] sm:$0xff]  ;;  %v55_v63 = vld [vmem:[%s1582_s1 + $0x48] sm:$0xff]  ;;  %v56_v28 = vld [vmem:[%s1582_s1 + $0x50] sm:$0xff] }
   0xb   :  { %850 = vmatmul.msk.bf16.vlgmr.msra.gmra.mxu2 %vm146_vm0, %v126_v21  ;;  %863 = vmatpush.bf16.msra.mxu3 %v859_v1  ;;  %v103_v44 = vpack.c.bf16 %v89_v41, %v88_v40  ;;  %v67_v51 = vmul.f32 %v51_v49, %v35_v47  ;;  %v98_v52 = vmul.f32 %v74_v7, %v74_v7  ;;  %v54_v62 = vld [vmem:[%s1582_s1 + $0x40] sm:$0xff]  ;;  %v36_v7 = vld [vmem:[%s1581_s0 + $0x30] sm:$0xff]  ;;  %v57_v29 = vld [vmem:[%s1582_s1 + $0x58] sm:$0xff] }
   0xc   :  { %v102_v24 = vpack.c.bf16 %v87_v23, %v86_v22  ;;  %826 = vmatmul.msk.bf16.vlgmr.msra.gmra.mxu0 %vm146_vm0, %v78_v25  ;;  %v114_v54 = vmul.f32 %v34_v46, %v34_v46  ;;  %v115_v55 = vmul.f32 %v35_v47, %v35_v47  ;;  %v90_v58 = vmul.f32 %v66_v50, %v66_v50  ;;  %v40_v22 = vld [vmem:[%s1581_s0 + $0x50] sm:$0xff]  ;;  %v41_v23 = vld [vmem:[%s1581_s0 + $0x58] sm:$0xff]  ;;  %v1158_v8 = vld [vmem:[%s1584_s6] ss:$0 sm:$0xff] }
   0xd   :  { %v91_v59 = vmul.f32 %v67_v51, %v67_v51  ;;  %v108_v60 = vpack.c.bf16 %v99_v53, %v98_v52  ;;  %v70_v0 = vmul.f32 %v54_v62, %v38_v56  ;;  %v71_v1 = vmul.f32 %v55_v63, %v39_v57 }
   0xe   :  { %838 = vmatmul.msk.bf16.vlgmr.msra.gmra.mxu1 %vm146_vm0, %v102_v24  ;;  %v128_v61 = vpack.c.bf16 %v115_v55, %v114_v54  ;;  %v80_v3 = vpack.c.bf16 %v67_v51, %v66_v50  ;;  %v68_v13 = vmul.f32 %v52_v11, %v36_v7  ;;  %v69_v14 = vmul.f32 %v53_v12, %v37_v10 }
   0xf   :  { %v104_v2 = vpack.c.bf16 %v91_v59, %v90_v58  ;;  %v94_v4 = vmul.f32 %v70_v0, %v70_v0  ;;  %v95_v5 = vmul.f32 %v71_v1, %v71_v1  ;;  %v100_v15 = vmul.f32 %v76_v36, %v76_v36 }
  0x10   :  { %v101_v16 = vmul.f32 %v77_v37, %v77_v37  ;;  %v116_v18 = vmul.f32 %v36_v7, %v36_v7  ;;  %v117_v19 = vmul.f32 %v37_v10, %v37_v10  ;;  %v92_v20 = vmul.f32 %v68_v13, %v68_v13  ;;  %v1175_v7 = vld [vmem:[%s1583_s5] ss:$0 sm:$0xff] }
  0x11   :  { %v106_v6 = vpack.c.bf16 %v95_v5, %v94_v4  ;;  %v93_v21 = vmul.f32 %v69_v14, %v69_v14  ;;  %v125_v31 = vmul.f32 %v1057_v27, %v1057_v27  ;;  %v72_v32 = vmul.f32 %v56_v28, %v40_v22 }
  0x12   :  { %v109_v24 = vpack.c.bf16 %v101_v16, %v100_v15  ;;  %v129_v25 = vpack.c.bf16 %v117_v19, %v116_v18  ;;  %v73_v33 = vmul.f32 %v57_v29, %v41_v23  ;;  %v81_v35 = vpack.c.bf16 %v69_v14, %v68_v13  ;;  %v594_v13 = vld [vmem:[%s1585_s7] sm:$0xff] }
  0x13   :  { %v105_v34 = vpack.c.bf16 %v93_v21, %v92_v20  ;;  %v133_v36 = vpack.c.bf16 %v125_v31, %v124_v30  ;;  %v96_v37 = vmul.f32 %v72_v32, %v72_v32  ;;  %v82_v26 = vpack.c.bf16 %v71_v1, %v70_v0 }
  0x14   :  { %v97_v38 = vmul.f32 %v73_v33, %v73_v33  ;;  %v83_v40 = vpack.c.bf16 %v73_v33, %v72_v32  ;;  %v118_v41 = vmul.f32 %v38_v56, %v38_v56  ;;  %v119_v27 = vmul.f32 %v39_v57, %v39_v57 }
  0x16   :  { %v107_v39 = vpack.c.bf16 %v97_v38, %v96_v37 }
  0x1a   :  { %833 = vmatmul.msk.bf16.gmra.mxu3 %vm146_vm0, %v85_v42  ;;  %v130_v42 = vpack.c.bf16 %v119_v27, %v118_v41 }
  0x1b   :  { %851 = vmatmul.msk.bf16.gmra.mxu2 %vm146_vm0, %v127_v43  ;;  %v120_v43 = vmul.f32 %v40_v22, %v40_v22 }
  0x1c   :  { %827 = vmatmul.msk.bf16.gmra.mxu0 %vm146_vm0, %v79_v45 }
  0x1e   :  { %839 = vmatmul.msk.bf16.gmra.mxu1 %vm146_vm0, %v103_v44  ;;  %v121_v44 = vmul.f32 %v41_v23, %v41_v23 }
  0x20   :  { %v131_v45 = vpack.c.bf16 %v121_v44, %v120_v43 }
  0x2a   :  { %844 = vmatmul.msk.bf16.vlgmr.msrb.gmra.mxu3 %vm146_vm0, %v108_v60 }
  0x2b   :  { %852 = vmatmul.msk.bf16.gmra.mxu2 %vm146_vm0, %v128_v61 }
  0x2c   :  { %828 = vmatmul.msk.bf16.gmra.mxu0 %vm146_vm0, %v80_v3 }
  0x2e   :  { %840 = vmatmul.msk.bf16.gmra.mxu1 %vm146_vm0, %v104_v2 }
  0x3a   :  { %845 = vmatmul.msk.bf16.gmra.mxu3 %vm146_vm0, %v109_v24 }
  0x3b   :  { %853 = vmatmul.msk.bf16.gmra.mxu2 %vm146_vm0, %v129_v25 }
  0x3c   :  { %829 = vmatmul.msk.bf16.gmra.mxu0 %vm146_vm0, %v81_v35  ;;  %v595_v35 = vld [vmem:[%s1585_s7 + $0x8] sm:$0xff] }
  0x3e   :  { %841 = vmatmul.msk.bf16.gmra.mxu1 %vm146_vm0, %v105_v34 }
  0x4a   :  { %856 = vmatmul.msk.bf16.vlgmr.msra.gmra.mxu3 %vm146_vm0, %v132_v17 }
  0x4b   :  { %854 = vmatmul.msk.bf16.gmra.mxu2 %vm146_vm0, %v130_v42 }
  0x4c   :  { %830 = vmatmul.msk.bf16.gmra.mxu0 %vm146_vm0, %v82_v26 }
  0x4e   :  { %842 = vmatmul.msk.bf16.gmra.mxu1 %vm146_vm0, %v106_v6 }
  0x5a   :  { %857 = vmatmul.msk.bf16.gmra.mxu3 %vm146_vm0, %v133_v36 }
  0x5b   :  { %855 = vmatmul.msk.bf16.gmra.mxu2 %vm146_vm0, %v131_v45 }
  0x5c   :  { %831 = vmatmul.msk.bf16.gmra.mxu0 %vm146_vm0, %v83_v40 }
  0x5e   :  { %843 = vmatmul.msk.bf16.gmra.mxu1 %vm146_vm0, %v107_v39 }
  0x89   :  { %v180_v48 = vpop.f32.mrf.mxu0 }
  0x8a   :  { %v181_v14 = vadd.f32 %v1175_v7, %v180_v48 }
  0x8b   :  { %v263_v46 = vpop.f32.mrf.mxu1 }
  0x8d   :  { %v1160_v9 = vpop.f32.mrf.mxu3 }
  0x8e   :  { %v342_v17 = vpop.f32.mrf.mxu2 }
  0x8f   :  { %v343_v47 = vadd.f32 %v342_v17, %v263_v46 }
  0x91   :  { %v386_v49 = vadd.f32 %v1158_v8, %v343_v47  ;;  %v182_v56 = vpop.f32.mrf.mxu0 }
  0x92   :  { %v183_v27 = vadd.f32 %v1175_v7, %v182_v56 }
  0x93   :  { %866 = vrsqrt.f32 %v386_v49  ;;  %v265_v50 = vpop.f32.mrf.mxu1  ;;  %vm409_vm1 = vcmp.eq.f32.partialorder %v386_v49, inf  ;;  %v412_v12 = vand.u32 2147483648, %v386_v49  ;;  %vm411_vm2 = vcmp.eq.f32.partialorder %v386_v49, 0.0 }
  0x95   :  { %v1163_v51 = vpop.f32.mrf.mxu3 }
  0x96   :  { %v344_v52 = vpop.f32.mrf.mxu2 }
  0x97   :  { %v345_v53 = vadd.f32 %v344_v52, %v265_v50 }
  0x99   :  { %v867_v54 = vpop.eup %866  ;;  %v387_v55 = vadd.f32 %v1158_v8, %v345_v53  ;;  %v185_v6 = vpop.f32.mrf.mxu0  ;;  %v596_v53 = vld [vmem:[%s1585_s7 + $0x10] sm:$0xff] }
  0x9a   :  { %v403_v57 = vmul.f32 %v867_v54, %v386_v49 }
  0x9b   :  { %868 = vrsqrt.f32 %v387_v55  ;;  %v268_v58 = vpop.f32.mrf.mxu1  ;;  %vm421_vm3 = vcmp.eq.f32.partialorder %v387_v55, inf  ;;  %v424_v34 = vand.u32 2147483648, %v387_v55  ;;  %vm423_vm4 = vcmp.eq.f32.partialorder %v387_v55, 0.0 }
  0x9c   :  { %v404_v59 = vmul.f32 %v867_v54, %v403_v57 }
  0x9d   :  { %v1166_v60 = vpop.f32.mrf.mxu3 }
  0x9e   :  { %v347_v61 = vpop.f32.mrf.mxu2  ;;  %v405_v62 = vmul.f32 0.5, %v404_v59 }
  0x9f   :  { %v348_v63 = vadd.f32 %v347_v61, %v268_v58 }
  0xa0   :  { %v406_v0 = vsub.f32 1.5, %v405_v62 }
  0xa1   :  { %v869_v1 = vpop.eup %868  ;;  %v1169_v2 = vadd.f32 %v1158_v8, %v348_v63  ;;  %v187_v36 = vpop.f32.mrf.mxu0 }
  0xa2   :  { %v407_v3 = vmul.f32 %v867_v54, %v406_v0  ;;  %v415_v4 = vmul.f32 %v869_v1, %v387_v55  ;;  %v186_v54 = vadd.f32 %v1175_v7, %v185_v6 }
  0xa3   :  { %870 = vrsqrt.f32 %v1169_v2  ;;  %v270_v5 = vpop.f32.mrf.mxu1  ;;  %vm433_vm5 = vcmp.eq.f32.partialorder %v1169_v2, inf  ;;  %v436_v52 = vand.u32 2147483648, %v1169_v2  ;;  %vm435_vm6 = vcmp.eq.f32.partialorder %v1169_v2, 0.0 }
  0xa4   :  { %v408_v10 = vmul.f32 %v407_v3, %v386_v49  ;;  %v416_v11 = vmul.f32 %v869_v1, %v415_v4 }
  0xa5   :  { %v1181_v15 = vpop.f32.mrf.mxu3 }
  0xa6   :  { %v349_v16 = vpop.f32.mrf.mxu2  ;;  %v410_v18 = vsel %vm409_vm1, %v386_v49, %v408_v10  ;;  %v417_v19 = vmul.f32 0.5, %v416_v11 }
  0xa7   :  { %v350_v20 = vadd.f32 %v349_v16, %v270_v5  ;;  %v413_v21 = vsel %vm411_vm2, %v412_v12, %v410_v18 }
  0xa8   :  { %v610_v22 = vmul.f32 %v594_v13, %v413_v21  ;;  %v418_v23 = vsub.f32 1.5, %v417_v19  ;;  %v597_v13 = vld [vmem:[%s1585_s7 + $0x18] sm:$0xff] }
  0xa9   :  { %v871_v24 = vpop.eup %870  ;;  %v1184_v25 = vadd.f32 %v1158_v8, %v350_v20  ;;  %v190_v62 = vpop.f32.mrf.mxu0 }
  0xaa   :  { %v1186_v28 = vadd.f32 %v610_v22, %v181_v14  ;;  %v419_v29 = vmul.f32 %v869_v1, %v418_v23  ;;  %v427_v30 = vmul.f32 %v871_v24, %v1169_v2  ;;  %v188_v22 = vadd.f32 %v1175_v7, %v187_v36 }
  0xab   :  { %872 = vrsqrt.f32 %v1184_v25  ;;  %v273_v31 = vpop.f32.mrf.mxu1  ;;  %vm445_vm7 = vcmp.eq.f32.partialorder %v1184_v25, inf  ;;  %v448_v12 = vand.u32 2147483648, %v1184_v25  ;;  %vm447_vm8 = vcmp.eq.f32.partialorder %v1184_v25, 0.0 }
  0xac   :  { %642 = vmax.xlane.f32.xlu0 %v1186_v28  ;;  %v420_v32 = vmul.f32 %v419_v29, %v387_v55  ;;  %v428_v33 = vmul.f32 %v871_v24, %v427_v30 }
  0xad   :  { %v1194_v37 = vpop.f32.mrf.mxu3 }
  0xae   :  { %v352_v38 = vpop.f32.mrf.mxu2  ;;  %v422_v39 = vsel %vm421_vm3, %v387_v55, %v420_v32  ;;  %v429_v26 = vmul.f32 0.5, %v428_v33 }
  0xaf   :  { %v353_v40 = vadd.f32 %v352_v38, %v273_v31  ;;  %v425_v41 = vsel %vm423_vm4, %v424_v34, %v422_v39  ;;  %v598_v39 = vld [vmem:[%s1585_s7 + $0x20] sm:$0xff] }
  0xb0   :  { %v611_v42 = vmul.f32 %v595_v35, %v425_v41  ;;  %v430_v43 = vsub.f32 1.5, %v429_v26  ;;  %v191_v26 = vadd.f32 %v1175_v7, %v190_v62 }
  0xb1   :  { %v873_v44 = vpop.eup %872  ;;  %v1198_v45 = vadd.f32 %v1158_v8, %v353_v40  ;;  %v192_v31 = vpop.f32.mrf.mxu0 }
  0xb2   :  { %v1200_v46 = vadd.f32 %v611_v42, %v183_v27  ;;  %v431_v17 = vmul.f32 %v871_v24, %v430_v43  ;;  %v439_v47 = vmul.f32 %v873_v44, %v1184_v25 }
  0xb3   :  { %874 = vrsqrt.f32 %v1198_v45  ;;  %v275_v48 = vpop.f32.mrf.mxu1  ;;  %vm457_vm9 = vcmp.eq.f32.partialorder %v1198_v45, inf  ;;  %v460_v38 = vand.u32 2147483648, %v1198_v45  ;;  %vm459_vm10 = vcmp.eq.f32.partialorder %v1198_v45, 0.0 }
  0xb4   :  { %644 = vmax.xlane.f32.xlu0 %v1200_v46  ;;  %v432_v49 = vmul.f32 %v431_v17, %v1169_v2  ;;  %v440_v50 = vmul.f32 %v873_v44, %v439_v47 }
  0xb5   :  { %v1212_v55 = vpop.f32.mrf.mxu3 }
  0xb6   :  { %v354_v56 = vpop.f32.mrf.mxu2  ;;  %v434_v57 = vsel %vm433_vm5, %v1169_v2, %v432_v49  ;;  %v441_v58 = vmul.f32 0.5, %v440_v50 }
  0xb7   :  { %v355_v59 = vadd.f32 %v354_v56, %v275_v48  ;;  %v437_v61 = vsel %vm435_vm6, %v436_v52, %v434_v57 }
  0xb8   :  { %v612_v63 = vmul.f32 %v596_v53, %v437_v61  ;;  %v442_v0 = vsub.f32 1.5, %v441_v58 }
  0xb9   :  { %v875_v1 = vpop.eup %874  ;;  %v1217_v3 = vadd.f32 %v1158_v8, %v355_v59  ;;  %v195_v56 = vpop.f32.mrf.mxu0  ;;  %v599_v59 = vld [vmem:[%s1585_s7 + $0x28] sm:$0xff] }
  0xba   :  { %v1219_v4 = vadd.f32 %v612_v63, %v186_v54  ;;  %v443_v5 = vmul.f32 %v873_v44, %v442_v0  ;;  %v451_v6 = vmul.f32 %v875_v1, %v1198_v45 }
  0xbb   :  { %876 = vrsqrt.f32 %v1217_v3  ;;  %v278_v10 = vpop.f32.mrf.mxu1  ;;  %vm469_vm11 = vcmp.eq.f32.partialorder %v1217_v3, inf  ;;  %v472_v58 = vand.u32 2147483648, %v1217_v3  ;;  %vm471_vm12 = vcmp.eq.f32.partialorder %v1217_v3, 0.0 }
  0xbc   :  { %646 = vmax.xlane.f32.xlu1 %v1219_v4  ;;  %v444_v2 = vmul.f32 %v443_v5, %v1184_v25  ;;  %v452_v11 = vmul.f32 %v875_v1, %v451_v6 }
  0xbd   :  { %v1230_v14 = vpop.f32.mrf.mxu3 }
  0xbe   :  { %v357_v16 = vpop.f32.mrf.mxu2  ;;  %v446_v18 = vsel %vm445_vm7, %v1184_v25, %v444_v2  ;;  %v453_v19 = vmul.f32 0.5, %v452_v11 }
  0xbf   :  { %v358_v20 = vadd.f32 %v357_v16, %v278_v10  ;;  %v449_v21 = vsel %vm447_vm8, %v448_v12, %v446_v18  ;;  %v193_v10 = vadd.f32 %v1175_v7, %v192_v31 }
  0xc0   :  { %v613_v23 = vmul.f32 %v597_v13, %v449_v21  ;;  %v454_v24 = vsub.f32 1.5, %v453_v19 }
  0xc1   :  { %v877_v29 = vpop.eup %876  ;;  %v1236_v30 = vadd.f32 %v1158_v8, %v358_v20 }
  0xc2   :  { %v1238_v32 = vadd.f32 %v613_v23, %v188_v22  ;;  %v455_v33 = vmul.f32 %v875_v1, %v454_v24  ;;  %v463_v34 = vmul.f32 %v877_v29, %v1217_v3  ;;  %v197_v22 = vpop.f32.mrf.mxu0  ;;  %v600_v24 = vld [vmem:[%s1585_s7 + $0x30] sm:$0xff] }
  0xc3   :  { %878 = vrsqrt.f32 %v1236_v30  ;;  %v280_v25 = vpop.f32.mrf.mxu1  ;;  %vm481_vm13 = vcmp.eq.f32.partialorder %v1236_v30, inf  ;;  %v484_v23 = vand.u32 2147483648, %v1236_v30  ;;  %vm483_vm14 = vcmp.eq.f32.partialorder %v1236_v30, 0.0 }
  0xc4   :  { %648 = vmax.xlane.f32.xlu1 %v1238_v32  ;;  %v456_v35 = vmul.f32 %v455_v33, %v1198_v45  ;;  %v464_v36 = vmul.f32 %v877_v29, %v463_v34 }
  0xc5   :  { %v1250_v40 = vpop.f32.mrf.mxu3 }
  0xc6   :  { %v359_v41 = vpop.f32.mrf.mxu2  ;;  %v458_v27 = vsel %vm457_vm9, %v1198_v45, %v456_v35  ;;  %v465_v42 = vmul.f32 0.5, %v464_v36 }
  0xc7   :  { %v360_v43 = vadd.f32 %v359_v41, %v280_v25  ;;  %v461_v44 = vsel %vm459_vm10, %v460_v38, %v458_v27 }
  0xc8   :  { %v614_v17 = vmul.f32 %v598_v39, %v461_v44  ;;  %v466_v47 = vsub.f32 1.5, %v465_v42 }
  0xc9   :  { %v879_v48 = vpop.eup %878  ;;  %v1255_v49 = vadd.f32 %v1158_v8, %v360_v43 }
  0xca   :  { %v1257_v50 = vadd.f32 %v614_v17, %v191_v26  ;;  %v467_v52 = vmul.f32 %v877_v29, %v466_v47  ;;  %v475_v53 = vmul.f32 %v879_v48, %v1236_v30  ;;  %v196_v29 = vadd.f32 %v1175_v7, %v195_v56 }
  0xcb   :  { %880 = vrsqrt.f32 %v1255_v49  ;;  %v283_v54 = vpop.f32.mrf.mxu1  ;;  %vm493_vm15 = vcmp.eq.f32.partialorder %v1255_v49, inf  ;;  %vm495_vm0 = vcmp.eq.f32.partialorder %v1255_v49, 0.0 }
  0xcc   :  { %650 = vmax.xlane.f32.xlu2 %v1257_v50  ;;  %v468_v45 = vmul.f32 %v467_v52, %v1217_v3  ;;  %v476_v57 = vmul.f32 %v879_v48, %v475_v53  ;;  %v496_v53 = vand.u32 2147483648, %v1255_v49 }
  0xcd   :  { %v372_v62 = vpop.f32.mrf.mxu3 }
  0xce   :  { %v362_v61 = vpop.f32.mrf.mxu2  ;;  %v470_v63 = vsel %vm469_vm11, %v1217_v3, %v468_v45  ;;  %v477_v0 = vmul.f32 0.5, %v476_v57  ;;  %v373_v5 = vadd.f32 %v372_v62, %v1194_v37 }
  0xcf   :  { %v363_v1 = vadd.f32 %v362_v61, %v283_v54  ;;  %v473_v6 = vsel %vm471_vm12, %v472_v58, %v470_v63  ;;  %v601_v54 = vld [vmem:[%s1585_s7 + $0x38] sm:$0xff]  ;;  %v200_v63 = vpop.f32.mrf.mxu0 }
  0xd0   :  { %v615_v2 = vmul.f32 %v599_v59, %v473_v6  ;;  %v478_v11 = vsub.f32 1.5, %v477_v0  ;;  %v1276_v16 = vadd.f32 %v1158_v8, %v373_v5  ;;  %v198_v5 = vadd.f32 %v1175_v7, %v197_v22 }
  0xd1   :  { %v881_v12 = vpop.eup %880  ;;  %v1273_v13 = vadd.f32 %v1158_v8, %v363_v1 }
  0xd2   :  { %v1278_v18 = vadd.f32 %v615_v2, %v193_v10  ;;  %v479_v19 = vmul.f32 %v879_v48, %v478_v11  ;;  %v487_v3 = vmul.f32 %v881_v12, %v1255_v49  ;;  %vm553_vm3 = vcmp.eq.f32.partialorder %v1276_v16, inf }
  0xd3   :  { %882 = vrsqrt.f32 %v1273_v13  ;;  %v285_v37 = vpop.f32.mrf.mxu1  ;;  %vm505_vm1 = vcmp.eq.f32.partialorder %v1273_v13, inf  ;;  %vm507_vm2 = vcmp.eq.f32.partialorder %v1273_v13, 0.0  ;;  %vm555_vm4 = vcmp.eq.f32.partialorder %v1276_v16, 0.0 }
  0xd4   :  { %884 = vrsqrt.f32 %v1276_v16  ;;  %652 = vmax.xlane.f32.xlu2 %v1278_v18  ;;  %v480_v20 = vmul.f32 %v479_v19, %v1236_v30  ;;  %v488_v21 = vmul.f32 %v881_v12, %v487_v3 }
  0xd5   :  { %v374_v33 = vpop.f32.mrf.mxu3 }
  0xd6   :  { %v364_v31 = vpop.f32.mrf.mxu2  ;;  %v482_v34 = vsel %vm481_vm13, %v1236_v30, %v480_v20  ;;  %v489_v25 = vmul.f32 0.5, %v488_v21  ;;  %v375_v36 = vadd.f32 %v374_v33, %v1212_v55  ;;  %v201_v20 = vadd.f32 %v1175_v7, %v200_v63 }
  0xd7   :  { %v365_v35 = vadd.f32 %v364_v31, %v285_v37  ;;  %v485_v38 = vsel %vm483_vm14, %v484_v23, %v482_v34  ;;  %v508_v23 = vand.u32 2147483648, %v1273_v13  ;;  %v602_v31 = vld [vmem:[%s1585_s7 + $0x40] sm:$0xff] }
  0xd8   :  { %v616_v39 = vmul.f32 %v600_v24, %v485_v38  ;;  %v490_v26 = vsub.f32 1.5, %v489_v25  ;;  %v1298_v42 = vadd.f32 %v1158_v8, %v375_v36  ;;  %v556_v38 = vand.u32 2147483648, %v1276_v16 }
  0xd9   :  { %v883_v41 = vpop.eup %882  ;;  %v1295_v27 = vadd.f32 %v1158_v8, %v365_v35 }
  0xda   :  { %v885_v43 = vpop.eup %884  ;;  %v1300_v44 = vadd.f32 %v616_v39, %v196_v29  ;;  %v491_v17 = vmul.f32 %v881_v12, %v490_v26  ;;  %v499_v30 = vmul.f32 %v883_v41, %v1273_v13  ;;  %v606_v39 = vld [vmem:[%s1585_s7 + $0x60] sm:$0xff]  ;;  %vm565_vm9 = vcmp.eq.f32.partialorder %v1298_v42, inf }
  0xdb   :  { %886 = vrsqrt.f32 %v1295_v27  ;;  %v288_v47 = vpop.f32.mrf.mxu1  ;;  %v547_v55 = vmul.f32 %v885_v43, %v1276_v16  ;;  %vm517_vm5 = vcmp.eq.f32.partialorder %v1295_v27, inf  ;;  %v520_v63 = vand.u32 2147483648, %v1295_v27 }
  0xdc   :  { %888 = vrsqrt.f32 %v1298_v42  ;;  %654 = vmax.xlane.f32.xlu0 %v1300_v44  ;;  %v492_v48 = vmul.f32 %v491_v17, %v1255_v49  ;;  %v500_v52 = vmul.f32 %v883_v41, %v499_v30  ;;  %vm519_vm6 = vcmp.eq.f32.partialorder %v1295_v27, 0.0 }
  0xdd   :  { %v548_v56 = vmul.f32 %v885_v43, %v547_v55  ;;  %v377_v57 = vpop.f32.mrf.mxu3  ;;  %vm567_vm10 = vcmp.eq.f32.partialorder %v1298_v42, 0.0 }
  0xde   :  { %v367_v45 = vpop.f32.mrf.mxu2  ;;  %v494_v58 = vsel %vm493_vm15, %v1255_v49, %v492_v48  ;;  %v501_v59 = vmul.f32 0.5, %v500_v52  ;;  %v378_v62 = vadd.f32 %v377_v57, %v1230_v14 }
  0xdf   :  { %v368_v61 = vadd.f32 %v367_v45, %v288_v47  ;;  %v497_v0 = vsel %vm495_vm0, %v496_v53, %v494_v58  ;;  %v549_v1 = vmul.f32 0.5, %v548_v56 }
  0xe0   :  { %v617_v6 = vmul.f32 %v601_v54, %v497_v0  ;;  %v502_v10 = vsub.f32 1.5, %v501_v59  ;;  %v1321_v12 = vadd.f32 %v1158_v8, %v378_v62  ;;  %v211_v54 = vadd.f32 %v1175_v7, %v1160_v9  ;;  %v603_v0 = vld [vmem:[%s1585_s7 + $0x48] sm:$0xff] }
  0xe1   :  { %v887_v2 = vpop.eup %886  ;;  %v1318_v11 = vadd.f32 %v1158_v8, %v368_v61  ;;  %v550_v19 = vsub.f32 1.5, %v549_v1 }
  0xe2   :  { %v1323_v49 = vpop.eup %888  ;;  %v1325_v3 = vadd.f32 %v617_v6, %v198_v5  ;;  %v503_v14 = vmul.f32 %v883_v41, %v502_v10  ;;  %v511_v37 = vmul.f32 %v887_v2, %v1295_v27  ;;  %vm577_vm15 = vcmp.eq.f32.partialorder %v1321_v12, inf }
  0xe3   :  { %890 = vrsqrt.f32 %v1318_v11  ;;  %v551_v21 = vmul.f32 %v885_v43, %v550_v19  ;;  %v290_v29 = vpop.f32.mrf.mxu1  ;;  %v559_v34 = vmul.f32 %v1323_v49, %v1298_v42  ;;  %vm529_vm7 = vcmp.eq.f32.partialorder %v1318_v11, inf }
  0xe4   :  { %656 = vmax.xlane.f32.xlu1 %v1325_v3  ;;  %v504_v22 = vmul.f32 %v503_v14, %v1273_v13  ;;  %v512_v24 = vmul.f32 %v887_v2, %v511_v37  ;;  %892 = vrsqrt.f32 %v1321_v12  ;;  %vm531_vm8 = vcmp.eq.f32.partialorder %v1318_v11, 0.0 }
  0xe5   :  { %v552_v33 = vmul.f32 %v551_v21, %v1276_v16  ;;  %v379_v35 = vpop.f32.mrf.mxu3  ;;  %v560_v52 = vmul.f32 %v1323_v49, %v559_v34  ;;  %vm579_vm0 = vcmp.eq.f32.partialorder %v1321_v12, 0.0 }
  0xe6   :  { %v369_v25 = vpop.f32.mrf.mxu2  ;;  %v506_v36 = vsel %vm505_vm1, %v1273_v13, %v504_v22  ;;  %v513_v26 = vmul.f32 0.5, %v512_v24  ;;  %v380_v43 = vadd.f32 %v379_v35, %v1250_v40  ;;  %v202_v40 = vpop.f32.mrf.mxu0 }
  0xe7   :  { %v370_v41 = vadd.f32 %v369_v25, %v290_v29  ;;  %v509_v17 = vsel %vm507_vm2, %v508_v23, %v506_v36  ;;  %v554_v30 = vsel %vm553_vm3, %v1276_v16, %v552_v33  ;;  %v561_v59 = vmul.f32 0.5, %v560_v52 }
  0xe8   :  { %v618_v47 = vmul.f32 %v602_v31, %v509_v17  ;;  %v557_v55 = vsel %vm555_vm4, %v556_v38, %v554_v30  ;;  %v514_v48 = vsub.f32 1.5, %v513_v26  ;;  %v1360_v45 = vadd.f32 %v1158_v8, %v380_v43 }
  0xe9   :  { %v891_v53 = vpop.eup %890  ;;  %v1357_v56 = vadd.f32 %v1158_v8, %v370_v41  ;;  %v622_v13 = vmul.f32 %v606_v39, %v557_v55  ;;  %v562_v1 = vsub.f32 1.5, %v561_v59  ;;  %v604_v39 = vld [vmem:[%s1585_s7 + $0x50] sm:$0xff] }
  0xea   :  { %v1362_v57 = vadd.f32 %v618_v47, %v201_v20  ;;  %v515_v16 = vmul.f32 %v887_v2, %v514_v48  ;;  %v523_v58 = vmul.f32 %v891_v53, %v1318_v11  ;;  %v893_v61 = vpop.eup %892  ;;  %v203_v2 = vadd.f32 %v1175_v7, %v202_v40 }
  0xeb   :  { %894 = vrsqrt.f32 %v1357_v56  ;;  %v1366_v62 = vadd.f32 %v622_v13, %v211_v54  ;;  %v571_v10 = vmul.f32 %v893_v61, %v1321_v12  ;;  %v563_v20 = vmul.f32 %v1323_v49, %v562_v1 }
  0xec   :  { %896 = vrsqrt.f32 %v1360_v45  ;;  %658 = vmax.xlane.f32.xlu2 %v1362_v57  ;;  %v516_v8 = vmul.f32 %v515_v16, %v1295_v27  ;;  %v524_v9 = vmul.f32 %v891_v53, %v523_v58  ;;  %v532_v49 = vand.u32 2147483648, %v1318_v11 }
  0xed   :  { %666 = vmax.xlane.f32.xlu0 %v1366_v62  ;;  %v572_v21 = vmul.f32 %v893_v61, %v571_v10  ;;  %v564_v36 = vmul.f32 %v563_v20, %v1298_v42  ;;  %v568_v54 = vand.u32 2147483648, %v1298_v42  ;;  %vm541_vm11 = vcmp.eq.f32.partialorder %v1357_v56, inf  ;;  %v609_v10 = vld [vmem:[%s1585_s7 + $0x78] sm:$0xff] }
  0xee   :  { %v518_v5 = vsel %vm517_vm5, %v1295_v27, %v516_v8  ;;  %v525_v6 = vmul.f32 0.5, %v524_v9  ;;  %v205_v27 = vpop.f32.mrf.mxu0  ;;  %v213_v8 = vadd.f32 %v1175_v7, %v1163_v51  ;;  %vm543_vm12 = vcmp.eq.f32.partialorder %v1357_v56, 0.0 }
  0xef   :  { %v521_v19 = vsel %vm519_vm6, %v520_v63, %v518_v5  ;;  %v573_v33 = vmul.f32 0.5, %v572_v21  ;;  %v206_v41 = vadd.f32 %v1175_v7, %v205_v27  ;;  %v566_v52 = vsel %vm565_vm9, %v1298_v42, %v564_v36  ;;  %v608_v27 = vld [vmem:[%s1585_s7 + $0x70] sm:$0xff] }
  0xf0   :  { %v619_v14 = vmul.f32 %v603_v0, %v521_v19  ;;  %v526_v37 = vsub.f32 1.5, %v525_v6  ;;  %v569_v58 = vsel %vm567_vm10, %v568_v54, %v566_v52  ;;  %v544_v42 = vand.u32 2147483648, %v1357_v56  ;;  %v605_v0 = vld [vmem:[%s1585_s7 + $0x58] sm:$0xff] }
  0xf1   :  { %v895_v22 = vpop.eup %894  ;;  %v574_v38 = vsub.f32 1.5, %v573_v33  ;;  %vm589_vm13 = vcmp.eq.f32.partialorder %v1360_v45, inf  ;;  %v592_v6 = vand.u32 2147483648, %v1360_v45  ;;  %vm591_vm14 = vcmp.eq.f32.partialorder %v1360_v45, 0.0 }
  0xf2   :  { %v897_v23 = vpop.eup %896  ;;  %v1382_v24 = vadd.f32 %v619_v14, %v203_v2  ;;  %v527_v29 = vmul.f32 %v891_v53, %v526_v37  ;;  %v535_v31 = vmul.f32 %v895_v22, %v1357_v56  ;;  %v218_v21 = vadd.f32 %v1175_v7, %v1181_v15 }
  0xf3   :  { %v583_v34 = vmul.f32 %v897_v23, %v1360_v45  ;;  %v575_v53 = vmul.f32 %v893_v61, %v574_v38 }
  0xf4   :  { %v528_v25 = vmul.f32 %v527_v29, %v1318_v11  ;;  %v536_v35 = vmul.f32 %v895_v22, %v535_v31 }
  0xf5   :  { %660 = vmax.xlane.f32.xlu0 %v1382_v24  ;;  %v584_v26 = vmul.f32 %v897_v23, %v583_v34  ;;  %v576_v9 = vmul.f32 %v575_v53, %v1321_v12  ;;  %v216_v34 = vadd.f32 %v1175_v7, %v1166_v60 }
  0xf6   :  { %v530_v43 = vsel %vm529_vm7, %v1318_v11, %v528_v25  ;;  %v537_v17 = vmul.f32 0.5, %v536_v35  ;;  %v607_v11 = vld [vmem:[%s1585_s7 + $0x68] sm:$0xff]  ;;  %v207_v63 = vpop.f32.mrf.mxu0 }
  0xf7   :  { %v533_v30 = vsel %vm531_vm8, %v532_v49, %v530_v43  ;;  %v585_v47 = vmul.f32 0.5, %v584_v26  ;;  %v623_v5 = vmul.f32 %v607_v11, %v569_v58  ;;  %v208_v14 = vadd.f32 %v1175_v7, %v207_v63 }
  0xf8   :  { %v620_v55 = vmul.f32 %v604_v39, %v533_v30  ;;  %v538_v48 = vsub.f32 1.5, %v537_v17  ;;  %v578_v20 = vsel %vm577_vm15, %v1321_v12, %v576_v9 }
  0xf9   :  { %v586_v40 = vsub.f32 1.5, %v585_v47  ;;  %v1434_v31 = vadd.f32 %v623_v5, %v213_v8 }
  0xfa   :  { %v1400_v13 = vadd.f32 %v620_v55, %v206_v41  ;;  %v539_v16 = vmul.f32 %v895_v22, %v538_v48 }
  0xfb   :  { %v587_v59 = vmul.f32 %v897_v23, %v586_v40  ;;  %v580_v23 = vand.u32 2147483648, %v1321_v12 }
  0xfc   :  { %662 = vmax.xlane.f32.xlu1 %v1400_v13  ;;  %v540_v61 = vmul.f32 %v539_v16, %v1357_v56 }
  0xfd   :  { %v588_v1 = vmul.f32 %v587_v59, %v1360_v45  ;;  %v581_v33 = vsel %vm579_vm0, %v580_v23, %v578_v20 }
  0xfe   :  { %v542_v51 = vsel %vm541_vm11, %v1357_v56, %v540_v61  ;;  %v624_v15 = vmul.f32 %v608_v27, %v581_v33 }
  0xff   :  { %v545_v2 = vsel %vm543_vm12, %v544_v42, %v542_v51  ;;  %v590_v19 = vsel %vm589_vm13, %v1360_v45, %v588_v1 }
 0x100   :  { %v621_v37 = vmul.f32 %v605_v0, %v545_v2  ;;  %v593_v56 = vsel %vm591_vm14, %v592_v6, %v590_v19  ;;  %v1447_v25 = vadd.f32 %v624_v15, %v216_v34 }
 0x101   :  { %v625_v22 = vmul.f32 %v609_v10, %v593_v56 }
 0x102   :  { %v1432_v29 = vadd.f32 %v621_v37, %v208_v14 }
 0x103   :  { %v1437_v45 = vadd.f32 %v625_v22, %v218_v21 }
 0x104   :  { %664 = vmax.xlane.f32.xlu2 %v1432_v29  ;;  %668 = vmax.xlane.f32.xlu1 %v1434_v31 }
 0x105   :  { %672 = vmax.xlane.f32.xlu0 %v1437_v45 }
 0x10c   :  { %670 = vmax.xlane.f32.xlu2 %v1447_v25 }
 0x11f   :  { %v643_v12 = vpop.xlane.xlu0 %642 }
 0x120   :  { %v1451_v35 = vsub.f32 %v1186_v28, %v643_v12 }
 0x122   :  { %v690_v36 = vmul.f32 1.442695, %v1451_v35 }
 0x124   :  { %898 = vpow2.f32 %v690_v36 }
 0x127   :  { %v645_v38 = vpop.xlane.xlu0 %644 }
 0x128   :  { %v1455_v49 = vsub.f32 %v1200_v46, %v645_v38 }
 0x12a   :  { %v899_v39 = vpop.eup %898  ;;  %v692_v26 = vmul.f32 1.442695, %v1455_v49 }
 0x12b   :  { %722 = vadd.xlane.f32.xlu1 %v899_v39 }
 0x12c   :  { %900 = vpow2.f32 %v692_v26 }
 0x12f   :  { %v647_v60 = vpop.xlane.xlu1 %646 }
 0x130   :  { %v1459_v7 = vsub.f32 %v1219_v4, %v647_v60 }
 0x132   :  { %v901_v41 = vpop.eup %900  ;;  %v694_v28 = vmul.f32 1.442695, %v1459_v7 }
 0x133   :  { %724 = vadd.xlane.f32.xlu2 %v901_v41 }
 0x134   :  { %902 = vpow2.f32 %v694_v28 }
 0x137   :  { %v649_v43 = vpop.xlane.xlu1 %648 }
 0x138   :  { %v1463_v17 = vsub.f32 %v1238_v32, %v649_v43 }
 0x13a   :  { %v903_v46 = vpop.eup %902  ;;  %v696_v30 = vmul.f32 1.442695, %v1463_v17 }
 0x13b   :  { %726 = vadd.xlane.f32.xlu0 %v903_v46 }
 0x13c   :  { %904 = vpow2.f32 %v696_v30 }
 0x13f   :  { %v651_v47 = vpop.xlane.xlu2 %650 }
 0x140   :  { %v1467_v55 = vsub.f32 %v1257_v50, %v651_v47 }
 0x142   :  { %v905_v4 = vpop.eup %904  ;;  %v698_v48 = vmul.f32 1.442695, %v1467_v55 }
 0x143   :  { %728 = vadd.xlane.f32.xlu1 %v905_v4 }
 0x144   :  { %906 = vpow2.f32 %v698_v48 }
 0x147   :  { %v653_v52 = vpop.xlane.xlu2 %652 }
 0x148   :  { %v1471_v53 = vsub.f32 %v1278_v18, %v653_v52 }
 0x14a   :  { %v907_v32 = vpop.eup %906  ;;  %v700_v54 = vmul.f32 1.442695, %v1471_v53 }
 0x14b   :  { %730 = vadd.xlane.f32.xlu2 %v907_v32 }
 0x14c   :  { %908 = vpow2.f32 %v700_v54 }
 0x14f   :  { %v655_v40 = vpop.xlane.xlu0 %654 }
 0x150   :  { %v1475_v16 = vsub.f32 %v1300_v44, %v655_v40 }
 0x152   :  { %v909_v50 = vpop.eup %908  ;;  %v702_v58 = vmul.f32 1.442695, %v1475_v16 }
 0x153   :  { %732 = vadd.xlane.f32.xlu0 %v909_v50 }
 0x154   :  { %910 = vpow2.f32 %v702_v58 }
 0x157   :  { %v657_v11 = vpop.xlane.xlu1 %656 }
 0x158   :  { %v1479_v59 = vsub.f32 %v1325_v3, %v657_v11 }
 0x15a   :  { %v911_v18 = vpop.eup %910  ;;  %v704_v8 = vmul.f32 1.442695, %v1479_v59 }
 0x15b   :  { %734 = vadd.xlane.f32.xlu1 %v911_v18 }
 0x15c   :  { %912 = vpow2.f32 %v704_v8 }
 0x15f   :  { %v659_v61 = vpop.xlane.xlu2 %658 }
 0x160   :  { %v1483_v9 = vsub.f32 %v1362_v57, %v659_v61  ;;  %v667_v44 = vpop.xlane.xlu0 %666 }
 0x161   :  { %v1486_v63 = vsub.f32 %v1366_v62, %v667_v44 }
 0x162   :  { %v913_v42 = vpop.eup %912  ;;  %v706_v0 = vmul.f32 1.442695, %v1483_v9 }
 0x163   :  { %v714_v1 = vmul.f32 1.442695, %v1486_v63  ;;  %736 = vadd.xlane.f32.xlu2 %v913_v42 }
 0x164   :  { %914 = vpow2.f32 %v706_v0 }
 0x165   :  { %916 = vpow2.f32 %v714_v1 }
 0x168   :  { %v661_v3 = vpop.xlane.xlu0 %660 }
 0x169   :  { %v1491_v51 = vsub.f32 %v1382_v24, %v661_v3 }
 0x16a   :  { %v915_v5 = vpop.eup %914 }
 0x16b   :  { %v917_v6 = vpop.eup %916  ;;  %v708_v57 = vmul.f32 1.442695, %v1491_v51  ;;  %738 = vadd.xlane.f32.xlu0 %v915_v5 }
 0x16c   :  { %746 = vadd.xlane.f32.xlu1 %v917_v6 }
 0x16d   :  { %918 = vpow2.f32 %v708_v57 }
 0x16f   :  { %v663_v62 = vpop.xlane.xlu1 %662 }
 0x170   :  { %v1495_v10 = vsub.f32 %v1400_v13, %v663_v62 }
 0x172   :  { %v710_v2 = vmul.f32 1.442695, %v1495_v10 }
 0x173   :  { %v919_v19 = vpop.eup %918 }
 0x174   :  { %920 = vpow2.f32 %v710_v2  ;;  %740 = vadd.xlane.f32.xlu1 %v919_v19 }
 0x177   :  { %v665_v14 = vpop.xlane.xlu2 %664  ;;  %v669_v37 = vpop.xlane.xlu1 %668 }
 0x178   :  { %v1499_v24 = vsub.f32 %v1432_v29, %v665_v14  ;;  %v1502_v56 = vsub.f32 %v1434_v31, %v669_v37  ;;  %v673_v20 = vpop.xlane.xlu0 %672 }
 0x179   :  { %v1505_v21 = vsub.f32 %v1437_v45, %v673_v20 }
 0x17a   :  { %v921_v22 = vpop.eup %920  ;;  %v712_v13 = vmul.f32 1.442695, %v1499_v24  ;;  %v716_v23 = vmul.f32 1.442695, %v1502_v56 }
 0x17b   :  { %v720_v33 = vmul.f32 1.442695, %v1505_v21  ;;  %742 = vadd.xlane.f32.xlu2 %v921_v22 }
 0x17c   :  { %922 = vpow2.f32 %v712_v13 }
 0x17d   :  { %924 = vpow2.f32 %v716_v23 }
 0x17e   :  { %926 = vpow2.f32 %v720_v33 }
 0x17f   :  { %v671_v29 = vpop.xlane.xlu2 %670 }
 0x180   :  { %v1511_v27 = vsub.f32 %v1447_v25, %v671_v29 }
 0x182   :  { %v923_v31 = vpop.eup %922  ;;  %v718_v15 = vmul.f32 1.442695, %v1511_v27 }
 0x183   :  { %v925_v45 = vpop.eup %924  ;;  %744 = vadd.xlane.f32.xlu0 %v923_v31 }
 0x184   :  { %v927_v34 = vpop.eup %926  ;;  %928 = vpow2.f32 %v718_v15  ;;  %748 = vadd.xlane.f32.xlu2 %v925_v45 }
 0x185   :  { %752 = vadd.xlane.f32.xlu1 %v927_v34 }
 0x18a   :  { %v929_v12 = vpop.eup %928 }
 0x18b   :  { %750 = vadd.xlane.f32.xlu0 %v929_v12 }
 0x19e   :  { %v723_v36 = vpop.xlane.xlu1 %722 }
 0x19f   :  { %930 = vlog2.f32 %v723_v36 }
 0x1a5   :  { %v931_v38 = vpop.eup %930 }
 0x1a6   :  { %v755_v39 = vmul.f32 0.6931472, %v931_v38  ;;  %v725_v26 = vpop.xlane.xlu2 %724 }
 0x1a7   :  { %932 = vlog2.f32 %v725_v26 }
 0x1a8   :  { %v786_v25 = vsub.f32 %v1451_v35, %v755_v39 }
 0x1aa   :  { %802 = vst [vmem:[%s1586_s8] sm:$0xff] %v786_v25 }
 0x1ad   :  { %v933_v60 = vpop.eup %932 }
 0x1ae   :  { %v757_v41 = vmul.f32 0.6931472, %v933_v60  ;;  %v727_v28 = vpop.xlane.xlu0 %726 }
 0x1af   :  { %934 = vlog2.f32 %v727_v28 }
 0x1b0   :  { %v787_v43 = vsub.f32 %v1455_v49, %v757_v41 }
 0x1b2   :  { %803 = vst [vmem:[%s1586_s8 + $0x8] sm:$0xff] %v787_v43 }
 0x1b5   :  { %v935_v46 = vpop.eup %934 }
 0x1b6   :  { %v759_v30 = vmul.f32 0.6931472, %v935_v46  ;;  %v729_v47 = vpop.xlane.xlu1 %728 }
 0x1b7   :  { %936 = vlog2.f32 %v729_v47 }
 0x1b8   :  { %v788_v35 = vsub.f32 %v1459_v7, %v759_v30 }
 0x1ba   :  { %804 = vst [vmem:[%s1586_s8 + $0x10] sm:$0xff] %v788_v35 }
 0x1bd   :  { %v937_v4 = vpop.eup %936 }
 0x1be   :  { %v761_v48 = vmul.f32 0.6931472, %v937_v4  ;;  %v731_v52 = vpop.xlane.xlu2 %730 }
 0x1bf   :  { %938 = vlog2.f32 %v731_v52 }
 0x1c0   :  { %v789_v49 = vsub.f32 %v1463_v17, %v761_v48 }
 0x1c2   :  { %805 = vst [vmem:[%s1586_s8 + $0x18] sm:$0xff] %v789_v49 }
 0x1c5   :  { %v939_v32 = vpop.eup %938 }
 0x1c6   :  { %v763_v54 = vmul.f32 0.6931472, %v939_v32  ;;  %v733_v40 = vpop.xlane.xlu0 %732 }
 0x1c7   :  { %940 = vlog2.f32 %v733_v40 }
 0x1c8   :  { %v790_v7 = vsub.f32 %v1467_v55, %v763_v54 }
 0x1ca   :  { %806 = vst [vmem:[%s1586_s8 + $0x20] sm:$0xff] %v790_v7 }
 0x1cd   :  { %v941_v50 = vpop.eup %940 }
 0x1ce   :  { %v765_v58 = vmul.f32 0.6931472, %v941_v50  ;;  %v735_v11 = vpop.xlane.xlu1 %734 }
 0x1cf   :  { %942 = vlog2.f32 %v735_v11 }
 0x1d0   :  { %v791_v17 = vsub.f32 %v1471_v53, %v765_v58 }
 0x1d2   :  { %807 = vst [vmem:[%s1586_s8 + $0x28] sm:$0xff] %v791_v17 }
 0x1d5   :  { %v943_v18 = vpop.eup %942 }
 0x1d6   :  { %v767_v8 = vmul.f32 0.6931472, %v943_v18  ;;  %v737_v61 = vpop.xlane.xlu2 %736 }
 0x1d7   :  { %944 = vlog2.f32 %v737_v61 }
 0x1d8   :  { %v792_v55 = vsub.f32 %v1475_v16, %v767_v8 }
 0x1da   :  { %808 = vst [vmem:[%s1586_s8 + $0x30] sm:$0xff] %v792_v55 }
 0x1dd   :  { %v945_v44 = vpop.eup %944 }
 0x1de   :  { %v769_v42 = vmul.f32 0.6931472, %v945_v44  ;;  %v739_v0 = vpop.xlane.xlu0 %738 }
 0x1df   :  { %v747_v1 = vpop.xlane.xlu1 %746  ;;  %946 = vlog2.f32 %v739_v0 }
 0x1e0   :  { %v793_v53 = vsub.f32 %v1479_v59, %v769_v42  ;;  %948 = vlog2.f32 %v747_v1 }
 0x1e2   :  { %809 = vst [vmem:[%s1586_s8 + $0x38] sm:$0xff] %v793_v53 }
 0x1e5   :  { %v947_v3 = vpop.eup %946 }
 0x1e6   :  { %v949_v5 = vpop.eup %948  ;;  %v771_v6 = vmul.f32 0.6931472, %v947_v3 }
 0x1e7   :  { %v779_v16 = vmul.f32 0.6931472, %v949_v5  ;;  %v741_v57 = vpop.xlane.xlu1 %740 }
 0x1e8   :  { %v794_v62 = vsub.f32 %v1483_v9, %v771_v6  ;;  %950 = vlog2.f32 %v741_v57 }
 0x1e9   :  { %v798_v2 = vsub.f32 %v1486_v63, %v779_v16 }
 0x1ea   :  { %810 = vst [vmem:[%s1586_s8 + $0x40] sm:$0xff] %v794_v62 }
 0x1eb   :  { %814 = vst [vmem:[%s1586_s8 + $0x60] sm:$0xff] %v798_v2 }
 0x1ee   :  { %v951_v59 = vpop.eup %950  ;;  %v743_v19 = vpop.xlane.xlu2 %742 }
 0x1ef   :  { %v773_v14 = vmul.f32 0.6931472, %v951_v59  ;;  %952 = vlog2.f32 %v743_v19 }
 0x1f1   :  { %v795_v37 = vsub.f32 %v1491_v51, %v773_v14 }
 0x1f3   :  { %811 = vst [vmem:[%s1586_s8 + $0x48] sm:$0xff] %v795_v37 }
 0x1f5   :  { %v953_v9 = vpop.eup %952 }
 0x1f6   :  { %v775_v63 = vmul.f32 0.6931472, %v953_v9  ;;  %v745_v20 = vpop.xlane.xlu0 %744 }
 0x1f7   :  { %v749_v22 = vpop.xlane.xlu2 %748  ;;  %954 = vlog2.f32 %v745_v20 }
 0x1f8   :  { %v796_v13 = vsub.f32 %v1495_v10, %v775_v63  ;;  %956 = vlog2.f32 %v749_v22  ;;  %v753_v23 = vpop.xlane.xlu1 %752 }
 0x1f9   :  { %958 = vlog2.f32 %v753_v23 }
 0x1fa   :  { %812 = vst [vmem:[%s1586_s8 + $0x50] sm:$0xff] %v796_v13 }
 0x1fd   :  { %v955_v33 = vpop.eup %954 }
 0x1fe   :  { %v957_v51 = vpop.eup %956  ;;  %v777_v29 = vmul.f32 0.6931472, %v955_v33  ;;  %v751_v31 = vpop.xlane.xlu0 %750 }
 0x1ff   :  { %v959_v15 = vpop.eup %958  ;;  %v781_v45 = vmul.f32 0.6931472, %v957_v51  ;;  %960 = vlog2.f32 %v751_v31 }
 0x200   :  { %v785_v34 = vmul.f32 0.6931472, %v959_v15  ;;  %v797_v12 = vsub.f32 %v1499_v24, %v777_v29 }
 0x201   :  { %v799_v36 = vsub.f32 %v1502_v56, %v781_v45 }
 0x202   :  { %v801_v10 = vsub.f32 %v1505_v21, %v785_v34  ;;  %813 = vst [vmem:[%s1586_s8 + $0x58] sm:$0xff] %v797_v12 }
 0x203   :  { %815 = vst [vmem:[%s1586_s8 + $0x68] sm:$0xff] %v799_v36 }
 0x204   :  { %817 = vst [vmem:[%s1586_s8 + $0x78] sm:$0xff] %v801_v10 }
 0x205   :  { %v961_v38 = vpop.eup %960 }
 0x206   :  { %v783_v39 = vmul.f32 0.6931472, %v961_v38 }
 0x208   :  { %v800_v24 = vsub.f32 %v1511_v27, %v783_v39 }
 0x20a   :  { %816 = vst [vmem:[%s1586_s8 + $0x70] sm:$0xff] %v800_v24 }

</bundles_post_ra>
